<compile_context>
chip_gen: v7x
topology: tpu7x:2x2x1
jax: 0.10.0
libtpu: 0.0.40
codegen_flags: <defaults>
</compile_context>

<pallas_src>
import math
import numpy as np

import jax
import jax.numpy as jnp
from jax import lax
from jax.experimental import pallas as pl
from jax.experimental.pallas import tpu as pltpu


# ----------------------------------------------------------------------------
# Kernel 1: fused x-side gate projections for the whole sequence
#   xproj = x2d @ [Wix|Wox|Wux|Wfx] + [bix+bih | box+boh | bux+buh | bfx+bfh]
# ----------------------------------------------------------------------------
def _xproj_kernel(x_ref, w_ref, b_ref, o_ref):
    o_ref[...] = (jnp.dot(x_ref[...], w_ref[...], preferred_element_type=jnp.float32)
                  + b_ref[...])


def xproj_pallas(x2d, wx, bx):
    vmem = pl.BlockSpec(memory_space=pltpu.MemorySpace.VMEM)
    return pl.pallas_call(
        _xproj_kernel,
        out_shape=jax.ShapeDtypeStruct((x2d.shape[0], wx.shape[1]), jnp.float32),
        in_specs=[vmem, vmem, vmem],
        out_specs=vmem,
    )(x2d, wx, bx)


# ----------------------------------------------------------------------------
# Kernel 2: one tree level.  grid=(B_pad,), one node per grid step.
#   scalar prefetch: counts (valid children per node), xidx (token row per node)
# ----------------------------------------------------------------------------
def _level_kernel(cnt_ref, idx_ref,                                   # SMEM prefetch
                  xp_ref, ch_ref, cc_ref,                             # per-node data
                  wqkv_ref, bqkv_ref, whiou_ref, wfh_ref, wl1_ref, bl1_ref,  # resident
                  out_ref):
    f32 = jnp.float32
    i = pl.program_id(0)
    n_valid = cnt_ref[i]                # number of (real or implicit-zero) children

    xp = xp_ref[0]                      # (1, 4*mem)  precomputed x-side gate pre-acts
    H = ch_ref[0]                       # (MC, mem)   padded child hidden states
    C = cc_ref[0]                       # (MC, mem)   padded child cell states
    MC, mem = H.shape
    norm = 1.0 / math.sqrt(mem)         # Self_Attn(mem_dim): 1/sqrt(mem_dim)

    # ---- Self_Attn over children (fused QKV, mask padded rows incl. their bias) ----
    qkv = jnp.dot(H, wqkv_ref[...], preferred_element_type=f32) + bqkv_ref[...]
    rows = lax.broadcasted_iota(jnp.int32, qkv.shape, 0)
    qkv = jnp.where(rows < n_valid, qkv, 0.0)
    q = qkv[:, 0:mem]
    k = qkv[:, mem:2 * mem]
    v = qkv[:, 2 * mem:3 * mem]

    # energy^T[b,a] = sum_n k[n,b] q[n,a];  softmax over axis 0 == softmax(energy,-1)^T
    energy_t = lax.dot_general(k, q, (((0,), (0,)), ((), ())),
                               preferred_element_type=f32) * norm          # (mem, mem)
    e_max = jnp.max(energy_t, axis=0, keepdims=True)
    e_exp = jnp.exp(energy_t - e_max)
    att_t = e_exp / jnp.sum(e_exp, axis=0, keepdims=True)                  # attention^T

    # h_sum = sum_n (v @ att^T)[n] == (colsum v) @ att^T   (MXU-native contraction)
    v_sum = jnp.sum(v, axis=0, keepdims=True)                              # (1, mem)
    h_sum = jnp.dot(v_sum, att_t, preferred_element_type=f32)              # (1, mem)

    # ---- Tree-LSTM gates (x-side terms + ALL biases already folded into xp) ----
    pre = xp[:, 0:3 * mem] + jnp.dot(h_sum, whiou_ref[...],
                                     preferred_element_type=f32)           # (1, 3*mem)
    i_g = jax.nn.sigmoid(pre[:, 0:mem])
    o_g = jax.nn.sigmoid(pre[:, mem:2 * mem])
    u_g = jnp.tanh(pre[:, 2 * mem:3 * mem])

    f_g = jax.nn.sigmoid(jnp.dot(H, wfh_ref[...], preferred_element_type=f32)
                         + xp[:, 3 * mem:4 * mem])                         # (MC, mem)
    fc = jnp.sum(f_g * C, axis=0, keepdims=True)      # padded rows have C == 0

    c_new = i_g * u_g + fc
    h_new = o_g * jnp.tanh(c_new)

    # ---- Classifier: LogSoftmax(Linear(h)); padded classes carry -1e9 bias -> exp==0
    logits = jnp.dot(h_new, wl1_ref[...], preferred_element_type=f32) + bl1_ref[...]
    lmax = jnp.max(logits, axis=-1, keepdims=True)
    lse = jnp.log(jnp.sum(jnp.exp(logits - lmax), axis=-1, keepdims=True)) + lmax
    logp = logits - lse

    # lane-dense packed writeback: [c | h | logp_pad]  -> (1, OUT_W) with OUT_W % 128 == 0
    out_ref[0] = jnp.concatenate([c_new, h_new, logp], axis=-1)


def make_level_call(mem, c_pad, b_pad, max_children, out_w):
    n3, n4 = 3 * mem, 4 * mem
    const2 = lambda i, cnt, idx: (0, 0)           # resident weights: constant block
    in_specs = [
        pl.BlockSpec((1, 1, n4), lambda i, cnt, idx: (idx[i], 0, 0)),         # xproj row
        pl.BlockSpec((1, max_children, mem), lambda i, cnt, idx: (i, 0, 0)),  # child_h
        pl.BlockSpec((1, max_children, mem), lambda i, cnt, idx: (i, 0, 0)),  # child_c
        pl.BlockSpec((mem, n3), const2),     # W_qkv
        pl.BlockSpec((1, n3), const2),       # b_qkv
        pl.BlockSpec((mem, n3), const2),     # W_h_iou
        pl.BlockSpec((mem, mem), const2),    # W_fh
        pl.BlockSpec((mem, c_pad), const2),  # W_l1 (zero-padded cols)
        pl.BlockSpec((1, c_pad), const2),    # b_l1 (-1e9 padded cols)
    ]
    out_specs = pl.BlockSpec((1, 1, out_w), lambda i, cnt, idx: (i, 0, 0))
    return pl.pallas_call(
        _level_kernel,
        out_shape=jax.ShapeDtypeStruct((b_pad, 1, out_w), jnp.float32),
        grid_spec=pltpu.PrefetchScalarGridSpec(
            num_scalar_prefetch=2,
            grid=(b_pad,),
            in_specs=in_specs,
            out_specs=out_specs),
        compiler_params=pltpu.CompilerParams(
            dimension_semantics=("parallel",)),
    )


# ----------------------------------------------------------------------------
# Tree structure + level-batched driver
# ----------------------------------------------------------------------------
class Tree:
    def __init__(self, idx, children=()):
        self.idx = idx
        self.children = list(children)
        self.state = None
        self.nid = -1
        self.level = 0


def collect_nodes_and_levels(root):
    nodes = []

    def visit(n):
        for ch in n.children:
            visit(ch)
        n.nid = len(nodes)
        n.level = 0 if not n.children else 1 + max(ch.level for ch in n.children)
        nodes.append(n)

    visit(root)
    levels = [[] for _ in range(root.level + 1)]
    for n in nodes:
        levels[n.level].append(n)
    return nodes, levels


def _round_up(x, m):
    return ((x + m - 1) // m) * m


def att_tree_lstm_forward(root, inputs, params):
    """Level-batched Pallas forward.  inputs: (seq, 1, in_dim).  Returns root log-probs (1,C)."""
    f32 = jnp.float32
    seq, _, in_dim = inputs.shape
    mem = params["bih"].shape[1]
    nclass = params["bl1"].shape[1]

    nodes, levels = collect_nodes_and_levels(root)
    num_nodes = len(nodes)
    max_ch = max(1, max(len(n.children) for n in nodes))
    MC = _round_up(max_ch, 8)                     # padded / masked child dim
    B_pad = max(len(lv) for lv in levels)         # fixed level bucket -> single compile
    OUT_W = _round_up(2 * mem + nclass, 128)      # packed, lane-dense output row
    C_pad = OUT_W - 2 * mem

    SENT = num_nodes        # zero-state row (leaf "zero child" / padding reads)
    DUMP = num_nodes + 1    # scratch row receiving padded grid slots' writebacks

    # ---- fused / folded parameters (built once) ----
    wqkv = jnp.concatenate([params["wq"], params["wk"], params["wv"]], axis=1)
    bqkv = jnp.concatenate([params["bq"], params["bk"], params["bv"]], axis=1)
    whiou = jnp.concatenate([params["wih"], params["woh"], params["wuh"]], axis=1)
    wx = jnp.concatenate([params["wix"], params["wox"], params["wux"], params["wfx"]], axis=1)
    bx = jnp.concatenate([params["bix"] + params["bih"],
                          params["box"] + params["boh"],
                          params["bux"] + params["buh"],
                          params["bfx"] + params["bfh"]], axis=1)
    wl1p = jnp.pad(params["wl1"], ((0, 0), (0, C_pad - nclass)))
    bl1p = jnp.pad(params["bl1"], ((0, 0), (0, C_pad - nclass)), constant_values=-1e9)
    wfh = params["wfh"]
    # TODO(synk): optionally cast fused weights to bf16 on v6e/v7x; kept f32 here for
    # exact parity with the f32 reference.

    # ---- x-side gate projections for the WHOLE sequence: one Pallas matmul ----
    xproj = xproj_pallas(inputs.reshape(seq, in_dim).astype(f32), wx, bx)   # (seq, 4*mem)
    xproj3 = xproj.reshape(seq, 1, 4 * mem)

    # ---- per-node state tables (row SENT stays zero; row DUMP is scratch) ----
    h_all = jnp.zeros((num_nodes + 2, mem), f32)
    c_all = jnp.zeros((num_nodes + 2, mem), f32)

    level_call = make_level_call(mem, C_pad, B_pad, MC, OUT_W)

    def _level_step(h_all, c_all, counts, xidx, child_idx, scat,
                    xproj3, wqkv, bqkv, whiou, wfh, wl1p, bl1p):
        ch = jnp.take(h_all, child_idx, axis=0)            # (B_pad, MC, mem) gather
        cc = jnp.take(c_all, child_idx, axis=0)
        out = level_call(counts, xidx, xproj3, ch, cc,
                         wqkv, bqkv, whiou, wfh, wl1p, bl1p)   # (B_pad, 1, OUT_W)
        out2 = out[:, 0, :]
        h_all = h_all.at[scat].set(out2[:, mem:2 * mem])
        c_all = c_all.at[scat].set(out2[:, 0:mem])
        return h_all, c_all, out2

    level_step = jax.jit(_level_step)

    last_out = None
    for lv in levels:
        counts = np.ones((B_pad,), np.int32)
        xidx = np.zeros((B_pad,), np.int32)
        child_idx = np.full((B_pad, MC), SENT, np.int32)
        scat = np.full((B_pad,), DUMP, np.int32)
        for j, n in enumerate(lv):
            xidx[j] = n.idx
            scat[j] = n.nid
            if n.children:
                counts[j] = len(n.children)
                for kk, ch in enumerate(n.children):
                    child_idx[j, kk] = ch.nid
            else:
                counts[j] = 1          # single implicit zero child (matches PyTorch)
        h_all, c_all, last_out = level_step(
            h_all, c_all,
            jnp.asarray(counts), jnp.asarray(xidx),
            jnp.asarray(child_idx), jnp.asarray(scat),
            xproj3, wqkv, bqkv, whiou, wfh, wl1p, bl1p)

    root_pos = levels[-1].index(root)
    logp_root = last_out[root_pos, 2 * mem:2 * mem + nclass].reshape(1, nclass)
    return logp_root


# ----------------------------------------------------------------------------
# Pure-JAX reference (same math, per-node recursion) for verification
# ----------------------------------------------------------------------------
def node_forward_ref(x, child_h, child_c, p):
    mem = child_h.shape[1]
    norm = 1.0 / math.sqrt(mem)
    q = child_h @ p["wq"] + p["bq"]
    k = child_h @ p["wk"] + p["bk"]
    v = child_h @ p["wv"] + p["bv"]
    energy = (q.T @ k) * norm
    att = jax.nn.softmax(energy, axis=-1)
    out = v @ att.T
    h_sum = jnp.sum(out, axis=0, keepdims=True)
    i = jax.nn.sigmoid(x @ p["wix"] + p["bix"] + h_sum @ p["wih"] + p["bih"])
    o = jax.nn.sigmoid(x @ p["wox"] + p["box"] + h_sum @ p["woh"] + p["boh"])
    u = jnp.tanh(x @ p["wux"] + p["bux"] + h_sum @ p["wuh"] + p["buh"])
    fx = x @ p["wfx"] + p["bfx"]
    f = jax.nn.sigmoid(child_h @ p["wfh"] + p["bfh"] + fx)
    fc = f * child_c
    c = i * u + jnp.sum(fc, axis=0, keepdims=True)
    h = o * jnp.tanh(c)
    logits = h @ p["wl1"] + p["bl1"]
    logp = jax.nn.log_softmax(logits, axis=-1)
    return c, h, logp


def tree_forward_ref(node, inputs, params):
    for ch in node.children:
        tree_forward_ref(ch, inputs, params)
    mem = params["bih"].shape[1]
    if len(node.children) == 0:
        child_c = jnp.zeros((1, mem), jnp.float32)
        child_h = jnp.zeros((1, mem), jnp.float32)
    else:
        child_c = jnp.concatenate([ch.state[0] for ch in node.children], axis=0)
        child_h = jnp.concatenate([ch.state[1] for ch in node.children], axis=0)
    c, h, logp = node_forward_ref(inputs[node.idx], child_h, child_c, params)
    node.state = (c, h)
    return logp


# ----------------------------------------------------------------------------
# Deterministic parameter construction (PyTorch-style uniform init)
# ----------------------------------------------------------------------------
def make_params(key, in_dim, mem_dim, num_classes):
    shapes = {
        "wq": (mem_dim, mem_dim), "wk": (mem_dim, mem_dim), "wv": (mem_dim, mem_dim),
        "wix": (in_dim, mem_dim), "wih": (mem_dim, mem_dim),
        "wox": (in_dim, mem_dim), "woh": (mem_dim, mem_dim),
        "wux": (in_dim, mem_dim), "wuh": (mem_dim, mem_dim),
        "wfx": (in_dim, mem_dim), "wfh": (mem_dim, mem_dim),
        "wl1": (mem_dim, num_classes),
    }
    params = {}
    keys = jax.random.split(key, 2 * len(shapes))
    for n, (wname, (fi, fo)) in enumerate(shapes.items()):
        bound = 1.0 / math.sqrt(fi)
        params[wname] = jax.random.uniform(keys[2 * n], (fi, fo), jnp.float32, -bound, bound)
        bname = "b" + wname[1:]
        params[bname] = jax.random.uniform(keys[2 * n + 1], (1, fo), jnp.float32, -bound, bound)
    return params
    # NOTE: the PyTorch module also defines self.ag (Linear(mem, mem)) but never uses it
    # in forward(), so it is intentionally omitted.


if __name__ == "__main__":
    IN_DIM, MEM_DIM, NUM_CLASSES, SEQ = 32, 32, 5, 4

    key = jax.random.PRNGKey(0)
    kp, kx = jax.random.split(key)
    params = make_params(kp, IN_DIM, MEM_DIM, NUM_CLASSES)
    inputs = jax.random.normal(kx, (SEQ, 1, IN_DIM), jnp.float32)   # (seq, 1, in_dim)

    # small tree:  root(0) -> [leaf(1), node(2) -> leaf(3)]
    root = Tree(0, [Tree(1), Tree(2, [Tree(3)])])
    root_ref = Tree(0, [Tree(1), Tree(2, [Tree(3)])])

    out_pallas = att_tree_lstm_forward(root, inputs, params)        # (1, NUM_CLASSES)
    out_ref = tree_forward_ref(root_ref, inputs, params)            # (1, NUM_CLASSES)

    jax.block_until_ready(out_pallas)
    np.testing.assert_allclose(np.asarray(out_pallas), np.asarray(out_ref),
                               rtol=1e-2, atol=1e-2)
    print("KERNEL_OK")
</pallas_src>

<mosaic_0001>
module attributes {stable_mosaic.version = 11 : i64} {
  func.func @_xproj_kernel(%arg0: memref<4x32xf32, #tpu.memory_space<vmem>>, %arg1: memref<32x128xf32, #tpu.memory_space<vmem>>, %arg2: memref<1x128xf32, #tpu.memory_space<vmem>>, %arg3: memref<4x128xf32, #tpu.memory_space<vmem>>) attributes {dimension_semantics = [], scalar_prefetch = 0 : i64, scratch_operands = 0 : i64, tpu.core_type = #tpu.core_type<tc>} {
    %c0 = arith.constant 0 : index
    %c0_0 = arith.constant 0 : index
    %0 = vector.load %arg0[%c0, %c0_0] : memref<4x32xf32, #tpu.memory_space<vmem>>, vector<4x32xf32>
    %c0_1 = arith.constant 0 : index
    %c0_2 = arith.constant 0 : index
    %1 = vector.load %arg1[%c0_1, %c0_2] : memref<32x128xf32, #tpu.memory_space<vmem>>, vector<32x128xf32>
    %cst = arith.constant dense<0.000000e+00> : vector<4x128xf32>
    %2 = tpu.matmul %0, %1, %cst {dimension_numbers = #tpu.dot_dimension_numbers<[1], [0], [0], [1], [0, 0, 1, 1], [], []>} : vector<4x32xf32>, vector<32x128xf32>, vector<4x128xf32> -> vector<4x128xf32>
    %c0_3 = arith.constant 0 : index
    %c0_4 = arith.constant 0 : index
    %3 = vector.load %arg2[%c0_3, %c0_4] : memref<1x128xf32, #tpu.memory_space<vmem>>, vector<1x128xf32>
    %4 = vector.broadcast %3 : vector<1x128xf32> to vector<4x128xf32>
    %5 = arith.addf %2, %4 : vector<4x128xf32>
    %c0_5 = arith.constant 0 : index
    %c0_6 = arith.constant 0 : index
    %6 = vector.load %arg3[%c0_5, %c0_6] : memref<4x128xf32, #tpu.memory_space<vmem>>, vector<4x128xf32>
    tpu.vector_store %arg3[%c0_5, %c0_6], %5 {strides = array<i32>} : memref<4x128xf32, #tpu.memory_space<vmem>>, vector<4x128xf32>,
    return
  }
}

</mosaic_0001>

<bundles_post_ra>
// kernel: tpu_custom_call.1
= control target key start
LH: loop header
LB: loop body
LE: loop exit
PB: predicated region body
PF: predicated region fallthrough
CT: control target
= control target key end

     0   :  { %8 = vsyncpa [#allocation3], 0  ;;  %s322_s0 = inlined_call_operand.hbm [shape: f32[4,32], index: 0, kind: input, shape index: {}]   ;;  %s323_s1 = inlined_call_operand.hbm [shape: f32[32,128], index: 1, kind: input, shape index: {}]   ;;  %s324_s2 = inlined_call_operand.vmem [shape: f32[1,128], index: 2, kind: input, shape index: {}]   ;;  %s325_s3 = inlined_call_operand.hbm [shape: f32[4,128], index: 3, kind: output, shape index: {}]  }
   0x1   :  { %9 = vsyncpa [#allocation6], 0 }
   0x2   :  { %10 = vsyncpa [#allocation4], 0  ;;  %s248_s12 = smov [#allocation2]   ;;  %s249_s14 = smov [#allocation5]  }
   0x3   :  { %s17_s13 = sshll.u32 %s248_s12, 4  ;;  %s26_s15 = sshll.u32 %s249_s14, 4  ;;  %s18_s13 = int_to_ptr.vmem [resolvable:$true] %s17_s13  ;;  %s276_s15 = int_to_ptr.vmem [resolvable:$true] %s26_s15 }
   0x4   :  { %s176_s18 = scalar_lea.hbm %s322_s0, 64 }
   0x5   :  { %p177_p0 = scmp.ne.s32.totalorder %s322_s0, %s176_s18  ;;  %p180_p1 = scmp.lt.u32.totalorder %s176_s18, %s322_s0 }
   0x7   :  { %p182_p2 = pnand %p180_p1, %p177_p0 }
   0x9   :  { %185 = shalt.err (!%p182_p2)
}
   0xa   :  { %s186_s23 = scalar_lea.vmem %s18_s13, 64  ;;  %p191_p4 = scmp.lt.s32.totalorder %s18_s13, %s18_s13 }
   0xb   :  { %p187_p3 = scmp.ne.s32.totalorder %s18_s13, %s186_s23  ;;  %p192_p5 = scmp.lt.s32.totalorder %s186_s23, %s186_s23 }
   0xd   :  { %p193_p6 = por %p192_p5, %p191_p4 }
   0xf   :  { %p194_p7 = pnand %p193_p6, %p187_p3 }
  0x11   :  { %197 = shalt.err (!%p194_p7)
}
  0x12   :  { %20 = dma.hbm_to_vmem [thread:$0]  %s322_s0, 64, %s18_s13, [#allocation3]  }
  0x13   :  { %s198_s28 = scalar_lea.hbm %s323_s1, 512 }
  0x14   :  { %p199_p8 = scmp.ne.s32.totalorder %s323_s1, %s198_s28  ;;  %p202_p9 = scmp.lt.u32.totalorder %s198_s28, %s323_s1 }
  0x16   :  { %p204_p10 = pnand %p202_p9, %p199_p8 }
  0x18   :  { %207 = shalt.err (!%p204_p10)
}
  0x19   :  { %s208_s6 = scalar_lea.vmem %s276_s15, 512  ;;  %p213_p12 = scmp.lt.s32.totalorder %s276_s15, %s276_s15 }
  0x1a   :  { %p209_p11 = scmp.ne.s32.totalorder %s276_s15, %s208_s6  ;;  %p214_p13 = scmp.lt.s32.totalorder %s208_s6, %s208_s6 }
  0x1c   :  { %p215_p0 = por %p214_p13, %p213_p12 }
  0x1e   :  { %p216_p1 = pnand %p215_p0, %p209_p11 }
  0x20   :  { %219 = shalt.err (!%p216_p1)
}
  0x21   :  { %s250_s0 = smov 128   ;;  %s251_s7 = smov 8  }
  0x22   :  { %32 = dma.hbm_to_vmem [thread:$0]  %s323_s1, 512, %s276_s15, [#allocation6], %s250_s0, %s250_s0, %s251_s7  }
  0x23   :  { %242 = dma.done.wait [#allocation3], 64  }
  0x24   :  { %243 = vsyncadd [#allocation3], 4294967232 }
  0x25   :  { %244 = dma.done.wait [#allocation6], 512  }
  0x26   :  { %245 = vsyncadd [#allocation6], 4294966784  ;;  %v252_v0 = vmov 0.0|0.0   ;;  %vm253_vm0 = vmmov 0   ;;  %v254_v1 = vmov 0.0   ;;  %v42_v2 = vld [vmem:[#allocation5] sm:$0xff] }
  0x27   :  { %162 = vmatprep.subr.bf16.mxu0 %v252_v0  ;;  %159 = vmatprep.mubr.msk.f32.mxu0 %vm253_vm0, %v254_v1  ;;  %v43_v3 = vld [vmem:[#allocation5 + $0x8] sm:$0xff]  ;;  %v44_v4 = vld [vmem:[#allocation5 + $0x10] sm:$0xff]  ;;  %v45_v6 = vld [vmem:[#allocation5 + $0x18] sm:$0xff]  ;;  %vm53_vm1 = vcmask 261120   ;;  %s255_s11 = smov [#allocation7]  }
  0x28   :  { %v163_v5 = vpack.c.bf16 %v43_v3, %v42_v2  ;;  %v166_v7 = vpack.c.bf16 %v45_v6, %v44_v4  ;;  %v41_v8 = vld [vmem:[#allocation2] sm:$0xf]  ;;  %s134_s12 = sshll.u32 %s255_s11, 4  ;;  %s135_s12 = int_to_ptr.vmem [resolvable:$true] %s134_s12 }
  0x29   :  { %v144_v9 = vld [vmem:[%s324_s2] ss:$0 sm:$0xff]  ;;  %s220_s13 = scalar_lea.vmem %s135_s12, 64  ;;  %p225_p3 = scmp.lt.s32.totalorder %s135_s12, %s135_s12 }
  0x2a   :  { %164 = vmatpush3.bf16.msra.mxu0 %v163_v5  ;;  %p221_p2 = scmp.ne.s32.totalorder %s135_s12, %s220_s13  ;;  %p226_p4 = scmp.lt.s32.totalorder %s220_s13, %s220_s13 }
  0x2b   :  { %165 = vmatprep.subr.bf16.mxu0 %v252_v0 }
  0x2c   :  { %p227_p5 = por %p226_p4, %p225_p3 }
  0x2e   :  { %167 = vmatpush3.bf16.msra.mxu0 %v166_v7  ;;  %p228_p6 = pnand %p227_p5, %p221_p2 }
  0x31   :  { %160 = vmatmul.mubr.msk.f32.vlgmr.msra.gmra.mrb[0].mxu0 %vm53_vm1, %v41_v8 }
 0x104   :  { %v123_v10 = vpop.f32.mrb[0].mxu0 }
 0x105   :  { %v124_v11 = vadd.f32 %v144_v9, %v123_v10  ;;  %v161_v12 = vpop.f32.mrb[1].mxu0 }
 0x107   :  { %127 = vst [vmem:[#allocation7] sm:$0xf] %v124_v11 }
 0x108   :  { %231 = shalt.err (!%p228_p6)
}
 0x109   :  { %s232_s16 = scalar_lea.hbm %s325_s3, 64 }
 0x10a   :  { %p233_p7 = scmp.ne.s32.totalorder %s325_s3, %s232_s16  ;;  %p236_p8 = scmp.lt.u32.totalorder %s232_s16, %s325_s3 }
 0x10c   :  { %p238_p9 = pnand %p236_p8, %p233_p7 }
 0x10e   :  { %241 = shalt.err (!%p238_p9)
}
 0x10f   :  { %137 = dma.vmem_to_hbm [thread:$0]  %s135_s12, 64, %s325_s3, [#allocation4]  }
 0x110   :  { %246 = dma.done.wait [#allocation4], 64  }
 0x111   :  { %247 = vsyncadd [#allocation4], 4294967232 }
 0x112   :  { %141 = vsyncpa [#allocation3], 1 }
 0x113   :  { %142 = vsyncpa [#allocation6], 1 }
 0x114   :  { %143 = vsyncpa [#allocation4], 1 }

</bundles_post_ra>
